<compile_context>
chip_gen: v6e
topology: v6e:2x2x1
jax: 0.10.0
libtpu: 0.0.40
codegen_flags: <defaults>
</compile_context>

<pallas_src>
import functools
import numpy as np

import jax
import jax.numpy as jnp
from jax import lax
from jax.experimental import pallas as pl
from jax.experimental.pallas import tpu as pltpu


# ----------------------------------------------------------------------------
# Fused forward kernel (single invocation, whole-array VMEM operands)
# ----------------------------------------------------------------------------
def _dot(a, b):
    # plain [M,K]x[K,N] matmul on the MXU, f32 accumulation
    return lax.dot_general(a, b, (((1,), (0,)), ((), ())),
                           preferred_element_type=jnp.float32)


def fused_forward_kernel(x_ref, adj_ref, badj_ref, s_ref, m_ref, bm_ref, pool_ref,
                         jmask_ref, eps1_ref, eps2_ref, g0_ref, g1_ref,
                         w1_ref, b1_ref, we1a_ref, we1b_ref, be1_ref,
                         wmu_ref, bmu_ref, wls_ref, bls_ref,
                         wg1_ref, bg1_ref, wg2_ref, bg2_ref,
                         out_ref):
    # 1) main GNN, return_hidden=True  -> hidden node embeddings [N, H]
    hidden = jnp.maximum(
        _dot(adj_ref[...], _dot(x_ref[...], w1_ref[...])) + b1_ref[...], 0.0)

    # 2) subgraph features: x_ori = x[nodes], xs = neighborhood means
    #    (gathers / means expressed as selection & averaging matmuls)
    x_ori = _dot(s_ref[...], hidden)          # [Tp, H]
    xs = _dot(m_ref[...], hidden)             # [Tp, H]

    # 3) VGAE encoder on the batched subgraphs -> mu, logstd.
    #    We1 is split by rows so sub_x = concat([x_ori, xs], -1) never exists.
    badj = badj_ref[...]
    h_pre = _dot(x_ori, we1a_ref[...]) + _dot(xs, we1b_ref[...])
    h_e = jnp.maximum(_dot(badj, h_pre) + be1_ref[...], 0.0)
    mu = _dot(badj, _dot(h_e, wmu_ref[...])) + bmu_ref[...]
    logstd = jnp.minimum(_dot(badj, _dot(h_e, wls_ref[...])) + bls_ref[...], 10.0)

    # edge_gen: reparametrize but only the root row j of each subgraph is
    # stochastic (one-hot jmask replaces the .at[].set scatter).
    # TODO(synk): the PyTorch reference aliases mu in-place between the two
    # reparametrizations; here z and xs_new are drawn independently from mu.
    std = jnp.exp(logstd)
    jm = jmask_ref[...]                        # [Tp, 1]
    z = mu + jm * (eps1_ref[...] * std)
    xs_new = mu + jm * (eps2_ref[...] * std)

    # 4) inner-product decode over all pairs + hard gumbel-softmax edge mask.
    #    log(p+eps) - log(1-p+eps) ~= s for p = sigmoid(s), so compare raw
    #    logits: keep edge iff s + g1 > g0.  block_mask restricts to
    #    within-subgraph pairs (the per-subgraph dense edge sets).
    s_logits = lax.dot_general(z, z, (((1,), (1,)), ((), ())),
                               preferred_element_type=jnp.float32)
    keep = (s_logits + g1_ref[...]) > g0_ref[...]
    a_new = jnp.where(keep, 1.0, 0.0) * bm_ref[...]

    # GCN-normalize the generated adjacency (self loops + symmetric norm),
    # fully in-kernel.  D^{-1/2} A D^{-1/2} done as diag-matmuls (no transpose).
    tpad = a_new.shape[0]
    rows = lax.broadcasted_iota(jnp.int32, (tpad, tpad), 0)
    cols = lax.broadcasted_iota(jnp.int32, (tpad, tpad), 1)
    eye = jnp.where(rows == cols, 1.0, 0.0).astype(jnp.float32)
    a_new = jnp.maximum(a_new, eye)
    deg = jnp.sum(a_new, axis=1, keepdims=True)          # [Tp, 1]
    dinv = lax.rsqrt(jnp.maximum(deg, 1e-12))
    dmat = eye * dinv                                     # diag(deg^-1/2)
    a_hat = _dot(_dot(dmat, a_new), dmat)

    # 5) batch_gnn (2-layer GCN, output_type='pool'): per-subgraph mean pool.
    # TODO(synk): exact internals of batch_gnn are not in the reference; a
    # standard 2-layer GCN + graph mean-pool is used.
    hg = jnp.maximum(_dot(a_hat, _dot(xs_new, wg1_ref[...])) + bg1_ref[...], 0.0)
    node_out = _dot(a_hat, _dot(hg, wg2_ref[...])) + bg2_ref[...]   # [Tp, Cp]
    out_ref[...] = _dot(pool_ref[...], node_out)                    # [Sp, Cp]


# ----------------------------------------------------------------------------
# Forward wrapper (one pallas_call; RNG + slicing of the padded output outside)
# ----------------------------------------------------------------------------
def forward(x, adj_hat, batch_adj_hat, S_all, M_all, block_mask, pool_mat, jmask,
            params, noise_key, *, num_subgraphs, num_classes):
    (W1, b1, We1a, We1b, be1, Wmu, bmu, Wls, bls, Wg1, bg1, Wg2, bg2) = params

    Tp = batch_adj_hat.shape[0]
    H = W1.shape[1]

    k1, k2, k3, k4 = jax.random.split(noise_key, 4)
    eps1 = jax.random.normal(k1, (Tp, H), jnp.float32)
    eps2 = jax.random.normal(k2, (Tp, H), jnp.float32)
    g0 = jax.random.gumbel(k3, (Tp, Tp), jnp.float32)
    g1 = jax.random.gumbel(k4, (Tp, Tp), jnp.float32)

    inputs = (x, adj_hat, batch_adj_hat, S_all, M_all, block_mask, pool_mat, jmask,
              eps1, eps2, g0, g1,
              W1, b1, We1a, We1b, be1, Wmu, bmu, Wls, bls, Wg1, bg1, Wg2, bg2)

    vmem = pl.BlockSpec(memory_space=pltpu.MemorySpace.VMEM)
    out_padded = pl.pallas_call(
        fused_forward_kernel,
        in_specs=[vmem] * len(inputs),
        out_specs=vmem,
        out_shape=jax.ShapeDtypeStruct((pool_mat.shape[0], Wg2.shape[1]),
                                       jnp.float32),
    )(*inputs)
    return out_padded[:num_subgraphs, :num_classes]


# ----------------------------------------------------------------------------
# Deterministic synthetic graph / parameters / structures (with padding)
# ----------------------------------------------------------------------------
def gcn_normalize(a):
    a = a + np.eye(a.shape[0], dtype=np.float32)
    d = a.sum(1)
    dinv = 1.0 / np.sqrt(np.maximum(d, 1e-12))
    return (a * dinv[:, None] * dinv[None, :]).astype(np.float32)


def _round_up(v, m):
    return ((v + m - 1) // m) * m


def build_structures(N, sample_idx, max_size):
    adj = np.zeros((N, N), np.float32)
    for i in range(N):
        for off in (1, 3):
            j = (i + off) % N
            adj[i, j] = 1.0
            adj[j, i] = 1.0
    np.fill_diagonal(adj, 0.0)
    neighbors = [set(np.nonzero(adj[i])[0].tolist()) for i in range(N)]

    # TODO(synk): original code samples neighbors / sample_idx with np.random;
    # made deterministic (sorted neighbor lists, fixed sample_idx).
    node_lists = []
    for idx in sample_idx:
        nbrs = sorted(neighbors[idx])[:max_size]
        node_lists.append([idx] + nbrs)

    sizes = [len(l) for l in node_lists]
    offsets = np.concatenate([[0], np.cumsum(sizes)[:-1]]).astype(np.int64)
    T = int(sum(sizes))
    Tp = _round_up(T, 8)                    # sublane-align the batched-node axis
    Sp = _round_up(len(sample_idx), 8)      # sublane-align the pooled-output axis

    S_all = np.zeros((Tp, N), np.float32)
    M_all = np.zeros((Tp, N), np.float32)
    A_batch = np.zeros((Tp, Tp), np.float32)
    block_mask = np.zeros((Tp, Tp), np.float32)
    pool_mat = np.zeros((Sp, Tp), np.float32)
    jmask = np.zeros((Tp, 1), np.float32)

    for si, nodes in enumerate(node_lists):
        off = int(offsets[si])
        m = len(nodes)
        pool_mat[si, off:off + m] = 1.0 / m
        block_mask[off:off + m, off:off + m] = 1.0
        jmask[off, 0] = 1.0                 # root row of each subgraph is stochastic
        for k, nd in enumerate(nodes):
            S_all[off + k, nd] = 1.0
            if k == 0:
                M_all[off + k, nodes] = 1.0 / m          # mean of x_ori
            else:
                hood = [nd] + sorted(neighbors[nd])[:max_size]
                M_all[off + k, hood] = 1.0 / len(hood)   # neighborhood mean
            for k2, nd2 in enumerate(nodes):             # adjust_edge
                if nd2 in neighbors[nd]:
                    A_batch[off + k, off + k2] = 1.0

    # Padding rows/cols are zero everywhere except the self-loop added by
    # gcn_normalize, so they are numerically inert for the real subgraphs.
    return (gcn_normalize(adj), gcn_normalize(A_batch), S_all, M_all,
            block_mask, pool_mat, jmask)


if __name__ == "__main__":
    N, D, H, C = 16, 8, 32, 4          # nodes, in-feat, hidden_channels, classes
    C_PAD = 128                         # lane-dense output slab width
    sample_idx = [0, 4, 8, 12]
    max_size = 20

    (adj_hat, batch_adj_hat, S_all, M_all, block_mask, pool_mat,
     jmask) = build_structures(N, sample_idx, max_size)

    key = jax.random.PRNGKey(0)
    keys = jax.random.split(key, 12)

    def init(k, shape, fan_in):
        return (jax.random.normal(k, shape, jnp.float32) / np.sqrt(fan_in)).astype(jnp.float32)

    # batch_gnn output head, zero-padded to a lane-dense (H, 128) slab
    Wg2 = jnp.zeros((H, C_PAD), jnp.float32).at[:, :C].set(init(keys[6], (H, C), H))
    bg2 = jnp.zeros((1, C_PAD), jnp.float32)

    params = (
        init(keys[0], (D, H), D),     jnp.zeros((1, H), jnp.float32),    # main GCN (hidden)
        init(keys[1], (H, H), 2 * H),                                    # VGCN enc l1, x_ori rows
        init(keys[2], (H, H), 2 * H), jnp.zeros((1, H), jnp.float32),    # VGCN enc l1, xs rows
        init(keys[3], (H, H), H),     jnp.zeros((1, H), jnp.float32),    # mu head
        init(keys[4], (H, H), H),     jnp.zeros((1, H), jnp.float32),    # logstd head
        init(keys[5], (H, H), H),     jnp.zeros((1, H), jnp.float32),    # batch_gnn l1
        Wg2,                          bg2,                               # batch_gnn l2 (padded)
    )

    x = jax.random.normal(keys[8], (N, D), jnp.float32)
    noise_key = keys[9]

    fwd = jax.jit(forward, static_argnames=("num_subgraphs", "num_classes"))
    out = fwd(x,
              jnp.asarray(adj_hat), jnp.asarray(batch_adj_hat),
              jnp.asarray(S_all), jnp.asarray(M_all),
              jnp.asarray(block_mask), jnp.asarray(pool_mat), jnp.asarray(jmask),
              params, noise_key,
              num_subgraphs=len(sample_idx), num_classes=C)
    jax.block_until_ready(out)
    assert out.shape == (len(sample_idx), C)
    assert bool(jnp.all(jnp.isfinite(out)))
    print("KERNEL_OK")
</pallas_src>

<mosaic_0001>
module attributes {stable_mosaic.version = 11 : i64} {
  func.func @fused_forward_kernel(%arg0: memref<16x8xf32, #tpu.memory_space<vmem>>, %arg1: memref<16x16xf32, #tpu.memory_space<vmem>>, %arg2: memref<24x24xf32, #tpu.memory_space<vmem>>, %arg3: memref<24x16xf32, #tpu.memory_space<vmem>>, %arg4: memref<24x16xf32, #tpu.memory_space<vmem>>, %arg5: memref<24x24xf32, #tpu.memory_space<vmem>>, %arg6: memref<8x24xf32, #tpu.memory_space<vmem>>, %arg7: memref<24x1xf32, #tpu.memory_space<vmem>>, %arg8: memref<24x32xf32, #tpu.memory_space<vmem>>, %arg9: memref<24x32xf32, #tpu.memory_space<vmem>>, %arg10: memref<24x24xf32, #tpu.memory_space<vmem>>, %arg11: memref<24x24xf32, #tpu.memory_space<vmem>>, %arg12: memref<8x32xf32, #tpu.memory_space<vmem>>, %arg13: memref<1x32xf32, #tpu.memory_space<vmem>>, %arg14: memref<32x32xf32, #tpu.memory_space<vmem>>, %arg15: memref<32x32xf32, #tpu.memory_space<vmem>>, %arg16: memref<1x32xf32, #tpu.memory_space<vmem>>, %arg17: memref<32x32xf32, #tpu.memory_space<vmem>>, %arg18: memref<1x32xf32, #tpu.memory_space<vmem>>, %arg19: memref<32x32xf32, #tpu.memory_space<vmem>>, %arg20: memref<1x32xf32, #tpu.memory_space<vmem>>, %arg21: memref<32x32xf32, #tpu.memory_space<vmem>>, %arg22: memref<1x32xf32, #tpu.memory_space<vmem>>, %arg23: memref<32x128xf32, #tpu.memory_space<vmem>>, %arg24: memref<1x128xf32, #tpu.memory_space<vmem>>, %arg25: memref<8x128xf32, #tpu.memory_space<vmem>>) attributes {dimension_semantics = [], scalar_prefetch = 0 : i64, scratch_operands = 0 : i64, tpu.core_type = #tpu.core_type<tc>} {
    %c0 = arith.constant 0 : index
    %c0_0 = arith.constant 0 : index
    %0 = vector.load %arg1[%c0, %c0_0] : memref<16x16xf32, #tpu.memory_space<vmem>>, vector<16x16xf32>
    %c0_1 = arith.constant 0 : index
    %c0_2 = arith.constant 0 : index
    %1 = vector.load %arg0[%c0_1, %c0_2] : memref<16x8xf32, #tpu.memory_space<vmem>>, vector<16x8xf32>
    %c0_3 = arith.constant 0 : index
    %c0_4 = arith.constant 0 : index
    %2 = vector.load %arg12[%c0_3, %c0_4] : memref<8x32xf32, #tpu.memory_space<vmem>>, vector<8x32xf32>
    %cst = arith.constant dense<0.000000e+00> : vector<16x32xf32>
    %3 = tpu.matmul %1, %2, %cst {dimension_numbers = #tpu.dot_dimension_numbers<[1], [0], [0], [1], [0, 0, 1, 1], [], []>} : vector<16x8xf32>, vector<8x32xf32>, vector<16x32xf32> -> vector<16x32xf32>
    %cst_5 = arith.constant dense<0.000000e+00> : vector<16x32xf32>
    %4 = tpu.matmul %0, %3, %cst_5 {dimension_numbers = #tpu.dot_dimension_numbers<[1], [0], [0], [1], [0, 0, 1, 1], [], []>} : vector<16x16xf32>, vector<16x32xf32>, vector<16x32xf32> -> vector<16x32xf32>
    %c0_6 = arith.constant 0 : index
    %c0_7 = arith.constant 0 : index
    %5 = vector.load %arg13[%c0_6, %c0_7] : memref<1x32xf32, #tpu.memory_space<vmem>>, vector<1x32xf32>
    %6 = vector.broadcast %5 : vector<1x32xf32> to vector<16x32xf32>
    %7 = arith.addf %4, %6 : vector<16x32xf32>
    %cst_8 = arith.constant 0.000000e+00 : f32
    %8 = vector.broadcast %cst_8 : f32 to vector<16x32xf32>
    %9 = arith.maximumf %7, %8 : vector<16x32xf32>
    %c0_9 = arith.constant 0 : index
    %c0_10 = arith.constant 0 : index
    %10 = vector.load %arg3[%c0_9, %c0_10] : memref<24x16xf32, #tpu.memory_space<vmem>>, vector<24x16xf32>
    %cst_11 = arith.constant dense<0.000000e+00> : vector<24x32xf32>
    %11 = tpu.matmul %10, %9, %cst_11 {dimension_numbers = #tpu.dot_dimension_numbers<[1], [0], [0], [1], [0, 0, 1, 1], [], []>} : vector<24x16xf32>, vector<16x32xf32>, vector<24x32xf32> -> vector<24x32xf32>
    %c0_12 = arith.constant 0 : index
    %c0_13 = arith.constant 0 : index
    %12 = vector.load %arg4[%c0_12, %c0_13] : memref<24x16xf32, #tpu.memory_space<vmem>>, vector<24x16xf32>
    %cst_14 = arith.constant dense<0.000000e+00> : vector<24x32xf32>
    %13 = tpu.matmul %12, %9, %cst_14 {dimension_numbers = #tpu.dot_dimension_numbers<[1], [0], [0], [1], [0, 0, 1, 1], [], []>} : vector<24x16xf32>, vector<16x32xf32>, vector<24x32xf32> -> vector<24x32xf32>
    %c0_15 = arith.constant 0 : index
    %c0_16 = arith.constant 0 : index
    %14 = vector.load %arg2[%c0_15, %c0_16] : memref<24x24xf32, #tpu.memory_space<vmem>>, vector<24x24xf32>
    %c0_17 = arith.constant 0 : index
    %c0_18 = arith.constant 0 : index
    %15 = vector.load %arg14[%c0_17, %c0_18] : memref<32x32xf32, #tpu.memory_space<vmem>>, vector<32x32xf32>
    %cst_19 = arith.constant dense<0.000000e+00> : vector<24x32xf32>
    %16 = tpu.matmul %11, %15, %cst_19 {dimension_numbers = #tpu.dot_dimension_numbers<[1], [0], [0], [1], [0, 0, 1, 1], [], []>} : vector<24x32xf32>, vector<32x32xf32>, vector<24x32xf32> -> vector<24x32xf32>
    %c0_20 = arith.constant 0 : index
    %c0_21 = arith.constant 0 : index
    %17 = vector.load %arg15[%c0_20, %c0_21] : memref<32x32xf32, #tpu.memory_space<vmem>>, vector<32x32xf32>
    %cst_22 = arith.constant dense<0.000000e+00> : vector<24x32xf32>
    %18 = tpu.matmul %13, %17, %cst_22 {dimension_numbers = #tpu.dot_dimension_numbers<[1], [0], [0], [1], [0, 0, 1, 1], [], []>} : vector<24x32xf32>, vector<32x32xf32>, vector<24x32xf32> -> vector<24x32xf32>
    %19 = arith.addf %16, %18 : vector<24x32xf32>
    %cst_23 = arith.constant dense<0.000000e+00> : vector<24x32xf32>
    %20 = tpu.matmul %14, %19, %cst_23 {dimension_numbers = #tpu.dot_dimension_numbers<[1], [0], [0], [1], [0, 0, 1, 1], [], []>} : vector<24x24xf32>, vector<24x32xf32>, vector<24x32xf32> -> vector<24x32xf32>
    %c0_24 = arith.constant 0 : index
    %c0_25 = arith.constant 0 : index
    %21 = vector.load %arg16[%c0_24, %c0_25] : memref<1x32xf32, #tpu.memory_space<vmem>>, vector<1x32xf32>
    %22 = vector.broadcast %21 : vector<1x32xf32> to vector<24x32xf32>
    %23 = arith.addf %20, %22 : vector<24x32xf32>
    %cst_26 = arith.constant 0.000000e+00 : f32
    %24 = vector.broadcast %cst_26 : f32 to vector<24x32xf32>
    %25 = arith.maximumf %23, %24 : vector<24x32xf32>
    %c0_27 = arith.constant 0 : index
    %c0_28 = arith.constant 0 : index
    %26 = vector.load %arg17[%c0_27, %c0_28] : memref<32x32xf32, #tpu.memory_space<vmem>>, vector<32x32xf32>
    %cst_29 = arith.constant dense<0.000000e+00> : vector<24x32xf32>
    %27 = tpu.matmul %25, %26, %cst_29 {dimension_numbers = #tpu.dot_dimension_numbers<[1], [0], [0], [1], [0, 0, 1, 1], [], []>} : vector<24x32xf32>, vector<32x32xf32>, vector<24x32xf32> -> vector<24x32xf32>
    %cst_30 = arith.constant dense<0.000000e+00> : vector<24x32xf32>
    %28 = tpu.matmul %14, %27, %cst_30 {dimension_numbers = #tpu.dot_dimension_numbers<[1], [0], [0], [1], [0, 0, 1, 1], [], []>} : vector<24x24xf32>, vector<24x32xf32>, vector<24x32xf32> -> vector<24x32xf32>
    %c0_31 = arith.constant 0 : index
    %c0_32 = arith.constant 0 : index
    %29 = vector.load %arg18[%c0_31, %c0_32] : memref<1x32xf32, #tpu.memory_space<vmem>>, vector<1x32xf32>
    %30 = vector.broadcast %29 : vector<1x32xf32> to vector<24x32xf32>
    %31 = arith.addf %28, %30 : vector<24x32xf32>
    %c0_33 = arith.constant 0 : index
    %c0_34 = arith.constant 0 : index
    %32 = vector.load %arg19[%c0_33, %c0_34] : memref<32x32xf32, #tpu.memory_space<vmem>>, vector<32x32xf32>
    %cst_35 = arith.constant dense<0.000000e+00> : vector<24x32xf32>
    %33 = tpu.matmul %25, %32, %cst_35 {dimension_numbers = #tpu.dot_dimension_numbers<[1], [0], [0], [1], [0, 0, 1, 1], [], []>} : vector<24x32xf32>, vector<32x32xf32>, vector<24x32xf32> -> vector<24x32xf32>
    %cst_36 = arith.constant dense<0.000000e+00> : vector<24x32xf32>
    %34 = tpu.matmul %14, %33, %cst_36 {dimension_numbers = #tpu.dot_dimension_numbers<[1], [0], [0], [1], [0, 0, 1, 1], [], []>} : vector<24x24xf32>, vector<24x32xf32>, vector<24x32xf32> -> vector<24x32xf32>
    %c0_37 = arith.constant 0 : index
    %c0_38 = arith.constant 0 : index
    %35 = vector.load %arg20[%c0_37, %c0_38] : memref<1x32xf32, #tpu.memory_space<vmem>>, vector<1x32xf32>
    %36 = vector.broadcast %35 : vector<1x32xf32> to vector<24x32xf32>
    %37 = arith.addf %34, %36 : vector<24x32xf32>
    %cst_39 = arith.constant 1.000000e+01 : f32
    %38 = vector.broadcast %cst_39 : f32 to vector<24x32xf32>
    %39 = arith.minimumf %37, %38 : vector<24x32xf32>
    %40 = math.exp %39 : vector<24x32xf32>
    %c0_40 = arith.constant 0 : index
    %c0_41 = arith.constant 0 : index
    %41 = vector.load %arg7[%c0_40, %c0_41] : memref<24x1xf32, #tpu.memory_space<vmem>>, vector<24x1xf32>
    %c0_42 = arith.constant 0 : index
    %c0_43 = arith.constant 0 : index
    %42 = vector.load %arg8[%c0_42, %c0_43] : memref<24x32xf32, #tpu.memory_space<vmem>>, vector<24x32xf32>
    %43 = arith.mulf %42, %40 : vector<24x32xf32>
    %44 = vector.broadcast %41 : vector<24x1xf32> to vector<24x32xf32>
    %45 = arith.mulf %44, %43 : vector<24x32xf32>
    %46 = arith.addf %31, %45 : vector<24x32xf32>
    %c0_44 = arith.constant 0 : index
    %c0_45 = arith.constant 0 : index
    %47 = vector.load %arg9[%c0_44, %c0_45] : memref<24x32xf32, #tpu.memory_space<vmem>>, vector<24x32xf32>
    %48 = arith.mulf %47, %40 : vector<24x32xf32>
    %49 = vector.broadcast %41 : vector<24x1xf32> to vector<24x32xf32>
    %50 = arith.mulf %49, %48 : vector<24x32xf32>
    %51 = arith.addf %31, %50 : vector<24x32xf32>
    %cst_46 = arith.constant dense<0.000000e+00> : vector<24x24xf32>
    %52 = tpu.matmul %46, %46, %cst_46 {dimension_numbers = #tpu.dot_dimension_numbers<[1], [1], [0], [0], [0, 0, 1, 0], [], []>} : vector<24x32xf32>, vector<24x32xf32>, vector<24x24xf32> -> vector<24x24xf32>
    %c0_47 = arith.constant 0 : index
    %c0_48 = arith.constant 0 : index
    %53 = vector.load %arg11[%c0_47, %c0_48] : memref<24x24xf32, #tpu.memory_space<vmem>>, vector<24x24xf32>
    %54 = arith.addf %52, %53 : vector<24x24xf32>
    %c0_49 = arith.constant 0 : index
    %c0_50 = arith.constant 0 : index
    %55 = vector.load %arg10[%c0_49, %c0_50] : memref<24x24xf32, #tpu.memory_space<vmem>>, vector<24x24xf32>
    %56 = arith.cmpf ogt, %54, %55 : vector<24x24xf32>
    %cst_51 = arith.constant 1.000000e+00 : f32
    %cst_52 = arith.constant 0.000000e+00 : f32
    %57 = vector.broadcast %cst_51 : f32 to vector<24x24xf32>
    %58 = vector.broadcast %cst_52 : f32 to vector<24x24xf32>
    %59 = arith.select %56, %57, %58 : vector<24x24xi1>, vector<24x24xf32>
    %c0_53 = arith.constant 0 : index
    %c0_54 = arith.constant 0 : index
    %60 = vector.load %arg5[%c0_53, %c0_54] : memref<24x24xf32, #tpu.memory_space<vmem>>, vector<24x24xf32>
    %61 = arith.mulf %59, %60 : vector<24x24xf32>
    %62 = tpu.iota {dimensions = array<i32: 0>} : vector<24x24xi32>
    %63 = tpu.iota {dimensions = array<i32: 1>} : vector<24x24xi32>
    %64 = arith.cmpi eq, %62, %63 : vector<24x24xi32>
    %cst_55 = arith.constant 1.000000e+00 : f32
    %cst_56 = arith.constant 0.000000e+00 : f32
    %65 = vector.broadcast %cst_55 : f32 to vector<24x24xf32>
    %66 = vector.broadcast %cst_56 : f32 to vector<24x24xf32>
    %67 = arith.select %64, %65, %66 : vector<24x24xi1>, vector<24x24xf32>
    %68 = arith.maximumf %61, %67 : vector<24x24xf32>
    %cst_57 = arith.constant dense<0.000000e+00> : vector<24xf32>
    %69 = vector.multi_reduction <add>, %68, %cst_57 [1] : vector<24x24xf32> to vector<24xf32>
    %70 = vector.shape_cast %69 : vector<24xf32> to vector<24x1xf32>
    %cst_58 = arith.constant 9.99999996E-13 : f32
    %71 = vector.broadcast %cst_58 : f32 to vector<24x1xf32>
    %72 = arith.maximumf %70, %71 : vector<24x1xf32>
    %73 = math.rsqrt %72 : vector<24x1xf32>
    %74 = vector.broadcast %73 : vector<24x1xf32> to vector<24x24xf32>
    %75 = arith.mulf %67, %74 : vector<24x24xf32>
    %cst_59 = arith.constant dense<0.000000e+00> : vector<24x24xf32>
    %76 = tpu.matmul %75, %68, %cst_59 {dimension_numbers = #tpu.dot_dimension_numbers<[1], [0], [0], [1], [0, 0, 1, 1], [], []>} : vector<24x24xf32>, vector<24x24xf32>, vector<24x24xf32> -> vector<24x24xf32>
    %cst_60 = arith.constant dense<0.000000e+00> : vector<24x24xf32>
    %77 = tpu.matmul %76, %75, %cst_60 {dimension_numbers = #tpu.dot_dimension_numbers<[1], [0], [0], [1], [0, 0, 1, 1], [], []>} : vector<24x24xf32>, vector<24x24xf32>, vector<24x24xf32> -> vector<24x24xf32>
    %c0_61 = arith.constant 0 : index
    %c0_62 = arith.constant 0 : index
    %78 = vector.load %arg21[%c0_61, %c0_62] : memref<32x32xf32, #tpu.memory_space<vmem>>, vector<32x32xf32>
    %cst_63 = arith.constant dense<0.000000e+00> : vector<24x32xf32>
    %79 = tpu.matmul %51, %78, %cst_63 {dimension_numbers = #tpu.dot_dimension_numbers<[1], [0], [0], [1], [0, 0, 1, 1], [], []>} : vector<24x32xf32>, vector<32x32xf32>, vector<24x32xf32> -> vector<24x32xf32>
    %cst_64 = arith.constant dense<0.000000e+00> : vector<24x32xf32>
    %80 = tpu.matmul %77, %79, %cst_64 {dimension_numbers = #tpu.dot_dimension_numbers<[1], [0], [0], [1], [0, 0, 1, 1], [], []>} : vector<24x24xf32>, vector<24x32xf32>, vector<24x32xf32> -> vector<24x32xf32>
    %c0_65 = arith.constant 0 : index
    %c0_66 = arith.constant 0 : index
    %81 = vector.load %arg22[%c0_65, %c0_66] : memref<1x32xf32, #tpu.memory_space<vmem>>, vector<1x32xf32>
    %82 = vector.broadcast %81 : vector<1x32xf32> to vector<24x32xf32>
    %83 = arith.addf %80, %82 : vector<24x32xf32>
    %cst_67 = arith.constant 0.000000e+00 : f32
    %84 = vector.broadcast %cst_67 : f32 to vector<24x32xf32>
    %85 = arith.maximumf %83, %84 : vector<24x32xf32>
    %c0_68 = arith.constant 0 : index
    %c0_69 = arith.constant 0 : index
    %86 = vector.load %arg23[%c0_68, %c0_69] : memref<32x128xf32, #tpu.memory_space<vmem>>, vector<32x128xf32>
    %cst_70 = arith.constant dense<0.000000e+00> : vector<24x128xf32>
    %87 = tpu.matmul %85, %86, %cst_70 {dimension_numbers = #tpu.dot_dimension_numbers<[1], [0], [0], [1], [0, 0, 1, 1], [], []>} : vector<24x32xf32>, vector<32x128xf32>, vector<24x128xf32> -> vector<24x128xf32>
    %cst_71 = arith.constant dense<0.000000e+00> : vector<24x128xf32>
    %88 = tpu.matmul %77, %87, %cst_71 {dimension_numbers = #tpu.dot_dimension_numbers<[1], [0], [0], [1], [0, 0, 1, 1], [], []>} : vector<24x24xf32>, vector<24x128xf32>, vector<24x128xf32> -> vector<24x128xf32>
    %c0_72 = arith.constant 0 : index
    %c0_73 = arith.constant 0 : index
    %89 = vector.load %arg24[%c0_72, %c0_73] : memref<1x128xf32, #tpu.memory_space<vmem>>, vector<1x128xf32>
    %90 = vector.broadcast %89 : vector<1x128xf32> to vector<24x128xf32>
    %91 = arith.addf %88, %90 : vector<24x128xf32>
    %c0_74 = arith.constant 0 : index
    %c0_75 = arith.constant 0 : index
    %92 = vector.load %arg6[%c0_74, %c0_75] : memref<8x24xf32, #tpu.memory_space<vmem>>, vector<8x24xf32>
    %cst_76 = arith.constant dense<0.000000e+00> : vector<8x128xf32>
    %93 = tpu.matmul %92, %91, %cst_76 {dimension_numbers = #tpu.dot_dimension_numbers<[1], [0], [0], [1], [0, 0, 1, 1], [], []>} : vector<8x24xf32>, vector<24x128xf32>, vector<8x128xf32> -> vector<8x128xf32>
    %c0_77 = arith.constant 0 : index
    %c0_78 = arith.constant 0 : index
    %94 = vector.load %arg25[%c0_77, %c0_78] : memref<8x128xf32, #tpu.memory_space<vmem>>, vector<8x128xf32>
    tpu.vector_store %arg25[%c0_77, %c0_78], %93 {strides = array<i32>} : memref<8x128xf32, #tpu.memory_space<vmem>>, vector<8x128xf32>,
    return
  }
}

</mosaic_0001>

<bundles_post_ra>
// kernel: forward.3
= control target key start
LH: loop header
LB: loop body
LE: loop exit
PB: predicated region body
PF: predicated region fallthrough
CT: control target
= control target key end

     0   :  { %vm85_vm0 = vcmask 64512   ;;  %vm174_vm1 = vcmask 130048   ;;  %v2362_v7 = vmov 0.0   ;;  %vm2363_vm2 = vmmov 0   ;;  %s2927_s12 = inlined_call_operand.vmem [shape: f32[8,32], index: 12, kind: input, shape index: {}]   ;;  %s2928_s0 = inlined_call_operand.vmem [shape: f32[16,8], index: 0, kind: input, shape index: {}]   ;;  %s2929_s1 = inlined_call_operand.vmem [shape: f32[16,16], index: 1, kind: input, shape index: {}]   ;;  %s2930_s13 = inlined_call_operand.vmem [shape: f32[1,32], index: 13, kind: input, shape index: {}]   ;;  %s2931_s3 = inlined_call_operand.vmem [shape: f32[24,16], index: 3, kind: input, shape index: {}]   ;;  %s2932_s4 = inlined_call_operand.vmem [shape: f32[24,16], index: 4, kind: input, shape index: {}]   ;;  %s2933_s15 = inlined_call_operand.vmem [shape: f32[32,32], index: 15, kind: input, shape index: {}]   ;;  %s2934_s14 = inlined_call_operand.vmem [shape: f32[32,32], index: 14, kind: input, shape index: {}]   ;;  %s2935_s17 = inlined_call_operand.vmem [shape: f32[32,32], index: 17, kind: input, shape index: {}]   ;;  %s2936_s2 = inlined_call_operand.vmem [shape: f32[24,24], index: 2, kind: input, shape index: {}]   ;;  %s2937_s16 = inlined_call_operand.vmem [shape: f32[1,32], index: 16, kind: input, shape index: {}]   ;;  %s2938_s19 = inlined_call_operand.vmem [shape: f32[32,32], index: 19, kind: input, shape index: {}]   ;;  %s2939_s7 = inlined_call_operand.vmem [shape: f32[24,1], index: 7, kind: input, shape index: {}]   ;;  %s2940_s20 = inlined_call_operand.vmem [shape: f32[1,32], index: 20, kind: input, shape index: {}]   ;;  %s2941_s9 = inlined_call_operand.vmem [shape: f32[24,32], index: 9, kind: input, shape index: {}]   ;;  %s2942_s18 = inlined_call_operand.vmem [shape: f32[1,32], index: 18, kind: input, shape index: {}]   ;;  %s2943_s8 = inlined_call_operand.vmem [shape: f32[24,32], index: 8, kind: input, shape index: {}]   ;;  %s2944_s11 = inlined_call_operand.vmem [shape: f32[24,24], index: 11, kind: input, shape index: {}]   ;;  %s2945_s10 = inlined_call_operand.vmem [shape: f32[24,24], index: 10, kind: input, shape index: {}]   ;;  %s2946_s5 = inlined_call_operand.vmem [shape: f32[24,24], index: 5, kind: input, shape index: {}]   ;;  %s2947_s21 = inlined_call_operand.vmem [shape: f32[32,32], index: 21, kind: input, shape index: {}]   ;;  %s2948_s23 = inlined_call_operand.vmem [shape: f32[32,128], index: 23, kind: input, shape index: {}]   ;;  %s2949_s22 = inlined_call_operand.vmem [shape: f32[1,32], index: 22, kind: input, shape index: {}]   ;;  %s2950_s24 = inlined_call_operand.vmem [shape: f32[1,128], index: 24, kind: input, shape index: {}]   ;;  %s2951_s6 = inlined_call_operand.vmem [shape: f32[8,24], index: 6, kind: input, shape index: {}]   ;;  %s2952_s25 = inlined_call_operand.vmem [shape: f32[8,128], index: 25, kind: output, shape index: {}]  }
   0x1   :  { %2961 = sst [smem:[#allocation2_spill]] %s2927_s12  ;;  %vm453_vm3 = vcmask 261120   ;;  %vm639_vm4 = vcmask 195584   ;;  %v1920_v63 = vld [vmem:[%s2937_s16] ss:$0 sm:$0xff] }
   0x2   :  { %2962 = sst [smem:[#allocation3_spill]] %s2928_s0 }
   0x3   :  { %2963 = sst [smem:[#allocation4_spill]] %s2929_s1 }
   0x4   :  { %2964 = sst [smem:[#allocation5_spill]] %s2930_s13 }
   0x5   :  { %2965 = sst [smem:[#allocation6_spill]] %s2931_s3 }
   0x6   :  { %2966 = sst [smem:[#allocation7_spill]] %s2932_s4 }
   0x7   :  { %2967 = sst [smem:[#allocation8_spill]] %s2933_s15 }
   0x8   :  { %2968 = sst [smem:[#allocation9_spill]] %s2934_s14 }
   0x9   :  { %2969 = sst [smem:[#allocation10_spill]] %s2935_s17 }
   0xa   :  { %2970 = sst [smem:[#allocation11_spill]] %s2936_s2 }
   0xb   :  { %s2971_s15 = sld [smem:[#allocation2_spill]] }
   0xc   :  { %s2972_s13 = sld [smem:[#allocation3_spill]] }
   0xd   :  { %s2973_s2 = sld [smem:[#allocation4_spill]] }
   0xe   :  { %s2974_s29 = sld [smem:[#allocation5_spill]] }
   0xf   :  { %s2975_s30 = sld [smem:[#allocation6_spill]] }
  0x10   :  { %s2976_s26 = sld [smem:[#allocation7_spill]] }
  0x11   :  { %v84_v0 = vld [vmem:[%s2971_s15] sm:$0xff]  ;;  %s2977_s27 = sld [smem:[#allocation8_spill]] }
  0x12   :  { %v82_v1 = vld [vmem:[%s2972_s13] sm:$0xff]  ;;  %v83_v2 = vld [vmem:[%s2972_s13 + $0x8] sm:$0xff]  ;;  %2076 = vmatprep.subr.mxu0 %v84_v0  ;;  %s2978_s28 = sld [smem:[#allocation9_spill]] }
  0x13   :  { %2078 = vmatprep.mubr.msk.f32.mxu0 %vm85_vm0, %v82_v1  ;;  %2077 = vmatpush3.msra.mxu0 %v84_v0  ;;  %v80_v3 = vld [vmem:[%s2973_s2] sm:$0xff]  ;;  %v81_v6 = vld [vmem:[%s2973_s2 + $0x8] sm:$0xff]  ;;  %s2979_s0 = sld [smem:[#allocation10_spill]] }
  0x14   :  { %2079 = vmatmul.mubr.msk.f32.vlgmr.msra.gmra.mxu0 %vm85_vm0, %v83_v2  ;;  %2085 = vmatprep.mubr.msk.f32.mxu1 %vm174_vm1, %v80_v3  ;;  %v1905_v8 = vld [vmem:[%s2974_s29] ss:$0 sm:$0xff]  ;;  %s2980_s3 = sld [smem:[#allocation11_spill]] }
  0x15   :  { %2088 = vmatprep.subr.mxu0 %v2362_v7  ;;  %2092 = vmatprep.mubr.msk.f32.mxu0 %vm2363_vm2, %v2362_v7  ;;  %v258_v15 = vld [vmem:[%s2975_s30] sm:$0xff]  ;;  %v259_v19 = vld [vmem:[%s2975_s30 + $0x8] sm:$0xff]  ;;  %v260_v23 = vld [vmem:[%s2975_s30 + $0x10] sm:$0xff] }
  0x16   :  { %v350_v16 = vld [vmem:[%s2976_s26] sm:$0xff]  ;;  %v351_v20 = vld [vmem:[%s2976_s26 + $0x8] sm:$0xff]  ;;  %v352_v24 = vld [vmem:[%s2976_s26 + $0x10] sm:$0xff] }
  0x17   :  { %v452_v17 = vld [vmem:[%s2977_s27 + $0x18] sm:$0xff]  ;;  %v451_v21 = vld [vmem:[%s2977_s27 + $0x10] sm:$0xff]  ;;  %v450_v25 = vld [vmem:[%s2977_s27 + $0x8] sm:$0xff] }
  0x18   :  { %v448_v18 = vld [vmem:[%s2978_s28 + $0x18] sm:$0xff]  ;;  %v447_v22 = vld [vmem:[%s2978_s28 + $0x10] sm:$0xff]  ;;  %v446_v26 = vld [vmem:[%s2978_s28 + $0x8] sm:$0xff] }
  0x19   :  { %v449_v27 = vld [vmem:[%s2977_s27] sm:$0xff]  ;;  %v735_v41 = vld [vmem:[%s2979_s0 + $0x18] sm:$0xff]  ;;  %v734_v60 = vld [vmem:[%s2979_s0 + $0x10] sm:$0xff] }
  0x1a   :  { %v445_v28 = vld [vmem:[%s2978_s28] sm:$0xff]  ;;  %v2630_v58 = vld [vmem:[%s2980_s3 + $0x8] sm:$0xff]  ;;  %v2639_v59 = vld [vmem:[%s2980_s3 + $0x10] sm:$0xff] }
  0x1b   :  { %v2619_v57 = vld [vmem:[%s2980_s3] sm:$0xff]  ;;  %v733_v61 = vld [vmem:[%s2979_s0 + $0x8] sm:$0xff] }
  0x1c   :  { %v732_v62 = vld [vmem:[%s2979_s0] sm:$0xff] }
  0xd4   :  { %v2080_v4 = vpop.f32.mrf.mxu0 }
  0xd5   :  { %2081 = vmatprep.subr.mxu1 %v2080_v4 }
  0xd6   :  { %v158_v5 = vpop.f32.mrf.mxu0  ;;  %2082 = vmatpush3.msra.mxu1 %v2080_v4  ;;  %v915_v4 = vld [vmem:[%s2938_s19 + $0x18] sm:$0xff] }
  0xd7   :  { %2083 = vmatprep.subr.mxu1 %v158_v5 }
  0xd8   :  { %2084 = vmatpush3.msra.mxu1 %v158_v5 }
  0xd9   :  { %2086 = vmatmul.mubr.msk.f32.vlgmr.msra.gmra.mxu1 %vm174_vm1, %v81_v6  ;;  %2101 = vmatprep.subr.mxu1 %v2362_v7 }
  0xda   :  { %2105 = vmatprep.mubr.msk.f32.mxu1 %vm2363_vm2, %v2362_v7 }
 0x199   :  { %v2087_v9 = vpop.f32.mrf.mxu1 }
 0x19a   :  { %v253_v10 = vadd.f32 %v2087_v9, %v1905_v8 }
 0x19b   :  { %v247_v11 = vpop.f32.mrf.mxu1 }
 0x19c   :  { %v257_v12 = vmax.f32 %v253_v10, 0.0  ;;  %v248_v13 = vadd.f32 %v1905_v8, %v247_v11  ;;  %v914_v8 = vld [vmem:[%s2938_s19 + $0x10] sm:$0xff]  ;;  %v913_v11 = vld [vmem:[%s2938_s19 + $0x8] sm:$0xff] }
 0x19e   :  { %v256_v14 = vmax.f32 %v248_v13, 0.0  ;;  %2089 = vmatpush3.msra.mxu0 %v257_v12  ;;  %2102 = vmatpush3.msra.mxu1 %v257_v12 }
 0x19f   :  { %2090 = vmatprep.subr.mxu0 %v2362_v7  ;;  %2103 = vmatprep.subr.mxu1 %v2362_v7 }
 0x1a0   :  { %2091 = vmatpush3.msra.mxu0 %v256_v14  ;;  %2104 = vmatpush3.msra.mxu1 %v256_v14  ;;  %v912_v14 = vld [vmem:[%s2938_s19] sm:$0xff] }
 0x1a1   :  { %2093 = vmatmul.mubr.msk.f32.vlgmr.msra.gmra.mxu0 %vm174_vm1, %v258_v15  ;;  %2106 = vmatmul.mubr.msk.f32.vlgmr.msra.gmra.mxu1 %vm174_vm1, %v350_v16 }
 0x1a2   :  { %2095 = vmatprep.mubr.msk.f32.mxu0 %vm2363_vm2, %v2362_v7  ;;  %2108 = vmatprep.mubr.msk.f32.mxu1 %vm2363_vm2, %v2362_v7 }
 0x1a3   :  { %2114 = vmatprep.subr.mxu0 %v2362_v7  ;;  %2131 = vmatprep.subr.mxu1 %v2362_v7 }
 0x1a4   :  { %2115 = vmatpush3.msra.mxu0 %v452_v17  ;;  %2132 = vmatpush3.msra.mxu1 %v448_v18  ;;  %v2364_v17 = vmov 0   ;;  %v1094_v18 = vld [vmem:[%s2939_s7 + $0x10] sm:$0xff] }
 0x1a5   :  { %2096 = vmatmul.mubr.msk.f32.gmra.mxu0 %vm174_vm1, %v259_v19  ;;  %2109 = vmatmul.mubr.msk.f32.gmra.mxu1 %vm174_vm1, %v351_v20  ;;  %v1092_v19 = vld [vmem:[%s2939_s7] sm:$0xff]  ;;  %v1093_v20 = vld [vmem:[%s2939_s7 + $0x8] sm:$0xff] }
 0x1a6   :  { %2098 = vmatprep.mubr.msk.f32.mxu0 %vm2363_vm2, %v2362_v7  ;;  %2111 = vmatprep.mubr.msk.f32.mxu1 %vm2363_vm2, %v2362_v7 }
 0x1a7   :  { %2116 = vmatprep.subr.mxu0 %v2362_v7  ;;  %2133 = vmatprep.subr.mxu1 %v2362_v7 }
 0x1a8   :  { %2117 = vmatpush3.msra.mxu0 %v451_v21  ;;  %2134 = vmatpush3.msra.mxu1 %v447_v22 }
 0x1a9   :  { %2099 = vmatmul.mubr.msk.f32.gmra.mxu0 %vm174_vm1, %v260_v23  ;;  %2112 = vmatmul.mubr.msk.f32.gmra.mxu1 %vm174_vm1, %v352_v24 }
 0x1aa   :  { %2118 = vmatprep.subr.mxu0 %v2362_v7  ;;  %2135 = vmatprep.subr.mxu1 %v2362_v7 }
 0x1ab   :  { %2119 = vmatpush3.msra.mxu0 %v450_v25  ;;  %2136 = vmatpush3.msra.mxu1 %v446_v26 }
 0x1ac   :  { %2120 = vmatprep.subr.mxu0 %v2362_v7  ;;  %2137 = vmatprep.subr.mxu1 %v2362_v7 }
 0x1ad   :  { %2122 = vmatprep.mubr.msk.f32.mxu0 %vm2363_vm2, %v2362_v7  ;;  %2139 = vmatprep.mubr.msk.f32.mxu1 %vm2363_vm2, %v2362_v7 }
 0x1ae   :  { %2121 = vmatpush3.msra.mxu0 %v449_v27  ;;  %2138 = vmatpush3.msra.mxu1 %v445_v28 }
 0x1af   :  { %2148 = vmatprep.subr.mxu0 %v2362_v7  ;;  %2163 = vmatprep.subr.mxu1 %v2362_v7 }
 0x1b0   :  { %2349 = vset.pattern.permute.xlu1 %v2364_v17  ;;  %2348 = vset.pattern.permute.xlu0 %v2364_v17 }
 0x1b1   :  { %1113 = vperm.xlu0 %2348, %v1094_v18   ;;  %1103 = vperm.xlu1 %2349, %v1092_v19  }
 0x1b5   :  { %1108 = vperm.xlu0 %2348, %v1093_v20  }
 0x261   :  { %v336_v29 = vpop.f32.mrf.mxu0  ;;  %v428_v30 = vpop.f32.mrf.mxu1 }
 0x262   :  { %2123 = vmatmul.mubr.msk.f32.vlgmr.msra.gmra.mxu0 %vm453_vm3, %v428_v30  ;;  %2140 = vmatmul.mubr.msk.f32.vlgmr.msra.gmra.mxu1 %vm453_vm3, %v336_v29 }
 0x263   :  { %v2094_v31 = vpop.f32.mrf.mxu0  ;;  %v2107_v32 = vpop.f32.mrf.mxu1  ;;  %2125 = vmatprep.mubr.msk.f32.mxu0 %vm2363_vm2, %v2362_v7  ;;  %2142 = vmatprep.mubr.msk.f32.mxu1 %vm2363_vm2, %v2362_v7 }
 0x264   :  { %2164 = vmatpush3.msra.mxu1 %v735_v41 }
 0x265   :  { %v341_v33 = vpop.f32.mrf.mxu0  ;;  %v433_v34 = vpop.f32.mrf.mxu1  ;;  %2165 = vmatprep.subr.mxu1 %v2362_v7 }
 0x266   :  { %2126 = vmatmul.mubr.msk.f32.gmra.mxu0 %vm453_vm3, %v433_v34  ;;  %2143 = vmatmul.mubr.msk.f32.gmra.mxu1 %vm453_vm3, %v341_v33 }
 0x267   :  { %v2097_v35 = vpop.f32.mrf.mxu0  ;;  %v2110_v36 = vpop.f32.mrf.mxu1  ;;  %2128 = vmatprep.mubr.msk.f32.mxu0 %vm2363_vm2, %v2362_v7  ;;  %2145 = vmatprep.mubr.msk.f32.mxu1 %vm2363_vm2, %v2362_v7 }
 0x268   :  { %2166 = vmatpush3.msra.mxu1 %v734_v60 }
 0x269   :  { %v346_v37 = vpop.f32.mrf.mxu0  ;;  %v438_v38 = vpop.f32.mrf.mxu1  ;;  %2167 = vmatprep.subr.mxu1 %v2362_v7 }
 0x26a   :  { %2129 = vmatmul.mubr.msk.f32.gmra.mxu0 %vm453_vm3, %v438_v38  ;;  %2146 = vmatmul.mubr.msk.f32.gmra.mxu1 %vm453_vm3, %v346_v37 }
 0x26b   :  { %v2100_v39 = vpop.f32.mrf.mxu0  ;;  %v2113_v40 = vpop.f32.mrf.mxu1  ;;  %2154 = vmatprep.mubr.msk.f32.mxu0 %vm2363_vm2, %v2362_v7  ;;  %2171 = vmatprep.mubr.msk.f32.mxu1 %vm2363_vm2, %v2362_v7 }
 0x26c   :  { %2168 = vmatpush3.msra.mxu1 %v733_v61  ;;  %v1934_v39 = vld [vmem:[%s2940_s20] ss:$0 sm:$0xff]  ;;  %v1123_v61 = vld [vmem:[%s2941_s9 + $0x8] sm:$0xff] }
 0x26d   :  { %2169 = vmatprep.subr.mxu1 %v2362_v7 }
 0x26e   :  { %2170 = vmatpush3.msra.mxu1 %v732_v62 }
 0x26f   :  { %2195 = vmatprep.subr.mxu1 %v2362_v7 }
 0x322   :  { %v529_v42 = vpop.f32.mrf.mxu0  ;;  %v618_v43 = vpop.f32.mrf.mxu1 }
 0x323   :  { %v619_v56 = vadd.f32 %v618_v43, %v529_v42 }
 0x324   :  { %v2124_v44 = vpop.f32.mrf.mxu0  ;;  %v2141_v45 = vpop.f32.mrf.mxu1 }
 0x326   :  { %v534_v46 = vpop.f32.mrf.mxu0  ;;  %v623_v47 = vpop.f32.mrf.mxu1 }
 0x327   :  { %v624_v55 = vadd.f32 %v623_v47, %v534_v46 }
 0x328   :  { %v2127_v48 = vpop.f32.mrf.mxu0  ;;  %v2144_v49 = vpop.f32.mrf.mxu1 }
 0x32a   :  { %v539_v50 = vpop.f32.mrf.mxu0  ;;  %v628_v51 = vpop.f32.mrf.mxu1 }
 0x32b   :  { %v629_v52 = vadd.f32 %v628_v51, %v539_v50 }
 0x32c   :  { %v2130_v53 = vpop.f32.mrf.mxu0  ;;  %v2147_v54 = vpop.f32.mrf.mxu1 }
 0x32d   :  { %2149 = vmatpush3.msra.mxu0 %v629_v52 }
 0x32e   :  { %2150 = vmatprep.subr.mxu0 %v2362_v7 }
 0x32f   :  { %2151 = vmatpush3.msra.mxu0 %v624_v55  ;;  %v1114_v55 = vpop.permute.xlu0 %1113 }
 0x330   :  { %2152 = vmatprep.subr.mxu0 %v2362_v7 }
 0x331   :  { %2153 = vmatpush3.msra.mxu0 %v619_v56  ;;  %v1122_v56 = vld [vmem:[%s2941_s9] sm:$0xff] }
 0x332   :  { %2155 = vmatmul.mubr.msk.f32.vlgmr.msra.gmra.mxu0 %vm639_vm4, %v2619_v57  ;;  %2180 = vmatprep.subr.mxu0 %v2362_v7 }
 0x333   :  { %2157 = vmatprep.mubr.msk.f32.mxu0 %vm2363_vm2, %v2362_v7 }
 0x336   :  { %2158 = vmatmul.mubr.msk.f32.gmra.mxu0 %vm639_vm4, %v2630_v58 }
 0x337   :  { %2160 = vmatprep.mubr.msk.f32.mxu0 %vm2363_vm2, %v2362_v7 }
 0x33a   :  { %2161 = vmatmul.mubr.msk.f32.gmra.mxu0 %vm639_vm4, %v2639_v59 }
 0x33b   :  { %2186 = vmatprep.mubr.msk.f32.mxu0 %vm2363_vm2, %v2362_v7 }
 0x3f2   :  { %v715_v0 = vpop.f32.mrf.mxu0 }
 0x3f3   :  { %v716_v1 = vadd.f32 %v1920_v63, %v715_v0 }
 0x3f4   :  { %v2156_v2 = vpop.f32.mrf.mxu0 }
 0x3f5   :  { %v729_v3 = vmax.f32 %v716_v1, 0.0  ;;  %v1109_v1 = vpop.permute.xlu0 %1108 }
 0x3f6   :  { %v720_v5 = vpop.f32.mrf.mxu0 }
 0x3f7   :  { %v721_v6 = vadd.f32 %v1920_v63, %v720_v5  ;;  %2172 = vmatmul.mubr.msk.f32.vlgmr.msra.gmra.mxu1 %vm453_vm3, %v729_v3  ;;  %v1124_v5 = vld [vmem:[%s2941_s9 + $0x10] sm:$0xff] }
 0x3f8   :  { %v2159_v9 = vpop.f32.mrf.mxu0  ;;  %2174 = vmatprep.mubr.msk.f32.mxu1 %vm2363_vm2, %v2362_v7  ;;  %2196 = vmatpush3.msra.mxu1 %v915_v4  ;;  %v1097_v4 = vld [vmem:[%s2943_s8 + $0x10] sm:$0xff] }
 0x3f9   :  { %v730_v10 = vmax.f32 %v721_v6, 0.0  ;;  %2197 = vmatprep.subr.mxu1 %v2362_v7  ;;  %v1096_v6 = vld [vmem:[%s2943_s8 + $0x8] sm:$0xff] }
 0x3fa   :  { %v725_v12 = vpop.f32.mrf.mxu0  ;;  %2198 = vmatpush3.msra.mxu1 %v914_v8 }
 0x3fb   :  { %v726_v13 = vadd.f32 %v1920_v63, %v725_v12  ;;  %2175 = vmatmul.mubr.msk.f32.gmra.mxu1 %vm453_vm3, %v730_v10  ;;  %2199 = vmatprep.subr.mxu1 %v2362_v7 }
 0x3fc   :  { %v2162_v15 = vpop.f32.mrf.mxu0  ;;  %2177 = vmatprep.mubr.msk.f32.mxu1 %vm2363_vm2, %v2362_v7  ;;  %2200 = vmatpush3.msra.mxu1 %v913_v11 }
 0x3fd   :  { %v731_v16 = vmax.f32 %v726_v13, 0.0  ;;  %2201 = vmatprep.subr.mxu1 %v2362_v7  ;;  %v1095_v15 = vld [vmem:[%s2943_s8] sm:$0xff] }
 0x3fe   :  { %2202 = vmatpush3.msra.mxu1 %v912_v14 }
 0x3ff   :  { %2178 = vmatmul.mubr.msk.f32.gmra.mxu1 %vm453_vm3, %v731_v16  ;;  %2227 = vmatprep.subr.mxu1 %v2362_v7 }
 0x400   :  { %2203 = vmatprep.mubr.msk.f32.mxu1 %vm2363_vm2, %v2362_v7 }
 0x403   :  { %2204 = vmatmul.mubr.msk.f32.vlgmr.msra.gmra.mxu1 %vm453_vm3, %v729_v3 }
 0x404   :  { %2206 = vmatprep.mubr.msk.f32.mxu1 %vm2363_vm2, %v2362_v7 }
 0x407   :  { %2207 = vmatmul.mubr.msk.f32.gmra.mxu1 %vm453_vm3, %v730_v10 }
 0x408   :  { %2209 = vmatprep.mubr.msk.f32.mxu1 %vm2363_vm2, %v2362_v7 }
 0x40b   :  { %2210 = vmatmul.mubr.msk.f32.gmra.mxu1 %vm453_vm3, %v731_v16 }
 0x40c   :  { %2233 = vmatprep.mubr.msk.f32.mxu1 %vm2363_vm2, %v2362_v7 }
 0x4b7   :  { %v811_v21 = vpop.f32.mrf.mxu1 }
 0x4b9   :  { %v2173_v22 = vpop.f32.mrf.mxu1 }
 0x4bb   :  { %v816_v23 = vpop.f32.mrf.mxu1 }
 0x4bd   :  { %v2176_v24 = vpop.f32.mrf.mxu1 }
 0x4bf   :  { %v821_v25 = vpop.f32.mrf.mxu1 }
 0x4c0   :  { %2181 = vmatpush3.msra.mxu0 %v821_v25 }
 0x4c1   :  { %v2179_v26 = vpop.f32.mrf.mxu1  ;;  %2182 = vmatprep.subr.mxu0 %v2362_v7 }
 0x4c2   :  { %2183 = vmatpush3.msra.mxu0 %v816_v23  ;;  %v1241_v26 = vlaneseq }
 0x4c3   :  { %2184 = vmatprep.subr.mxu0 %v2362_v7  ;;  %v982_v27 = vpop.f32.mrf.mxu1 }
 0x4c4   :  { %2185 = vmatpush3.msra.mxu0 %v811_v21 }
 0x4c5   :  { %2187 = vmatmul.mubr.msk.f32.vlgmr.msra.gmra.mxu0 %vm639_vm4, %v2619_v57  ;;  %v2205_v28 = vpop.f32.mrf.mxu1  ;;  %2212 = vmatprep.subr.mxu0 %v2362_v7 }
 0x4c6   :  { %2189 = vmatprep.mubr.msk.f32.mxu0 %vm2363_vm2, %v2362_v7  ;;  %v1246_v28 = vand.u32 127, %v1241_v26 }
 0x4c7   :  { %v987_v29 = vpop.f32.mrf.mxu1 }
 0x4c9   :  { %2190 = vmatmul.mubr.msk.f32.gmra.mxu0 %vm639_vm4, %v2630_v58  ;;  %v2208_v30 = vpop.f32.mrf.mxu1 }
 0x4ca   :  { %2192 = vmatprep.mubr.msk.f32.mxu0 %vm2363_vm2, %v2362_v7 }
 0x4cb   :  { %v992_v31 = vpop.f32.mrf.mxu1 }
 0x4cc   :  { %2213 = vmatpush3.msra.mxu0 %v992_v31  ;;  %v1226_v31 = vld [vmem:[%s2945_s10] sm:$0xff] }
 0x4cd   :  { %2193 = vmatmul.mubr.msk.f32.gmra.mxu0 %vm639_vm4, %v2639_v59  ;;  %v2211_v32 = vpop.f32.mrf.mxu1  ;;  %2214 = vmatprep.subr.mxu0 %v2362_v7 }
 0x4ce   :  { %2215 = vmatpush3.msra.mxu0 %v987_v29  ;;  %2218 = vmatprep.mubr.msk.f32.mxu0 %vm2363_vm2, %v2362_v7  ;;  %v1134_v29 = vld [vmem:[%s2944_s11] sm:$0xff] }
 0x4cf   :  { %2216 = vmatprep.subr.mxu0 %v2362_v7 }
 0x4d0   :  { %2217 = vmatpush3.msra.mxu0 %v982_v27  ;;  %v1242_v27 = vshrl.u32 %v1241_v26, 7 }
 0x4d1   :  { %2219 = vmatmul.mubr.msk.f32.vlgmr.msra.gmra.mxu0 %vm639_vm4, %v2619_v57  ;;  %2242 = vmatprep.subr.mxu0 %v2362_v7 }
 0x4d2   :  { %2221 = vmatprep.mubr.msk.f32.mxu0 %vm2363_vm2, %v2362_v7  ;;  %vm1247_vm5 = vcmp.eq.s32.totalorder %v1242_v27, %v1246_v28 }
 0x4d5   :  { %2222 = vmatmul.mubr.msk.f32.gmra.mxu0 %vm639_vm4, %v2630_v58  ;;  %v1927_v58 = vld [vmem:[%s2942_s18] ss:$0 sm:$0xff] }
 0x4d6   :  { %2224 = vmatprep.mubr.msk.f32.mxu0 %vm2363_vm2, %v2362_v7 }
 0x4d9   :  { %2225 = vmatmul.mubr.msk.f32.gmra.mxu0 %vm639_vm4, %v2639_v59  ;;  %v1104_v59 = vpop.permute.xlu1 %1103 }
 0x4da   :  { %2248 = vmatprep.mubr.msk.f32.mxu0 %vm2363_vm2, %v2362_v7 }
 0x585   :  { %v898_v33 = vpop.f32.mrf.mxu0 }
 0x586   :  { %v899_v62 = vadd.f32 %v1927_v58, %v898_v33  ;;  %v1243_v33 = vadd.s32 8, %v1242_v27 }
 0x587   :  { %v2188_v34 = vpop.f32.mrf.mxu0 }
 0x588   :  { %vm1248_vm7 = vcmp.eq.s32.totalorder %v1243_v33, %v1246_v28 }
 0x589   :  { %v903_v35 = vpop.f32.mrf.mxu0 }
 0x58a   :  { %v904_v8 = vadd.f32 %v1927_v58, %v903_v35  ;;  %v1135_v35 = vld [vmem:[%s2944_s11 + $0x8] sm:$0xff] }
 0x58b   :  { %v2191_v36 = vpop.f32.mrf.mxu0 }
 0x58c   :  { %v1235_v36 = vld [vmem:[%s2946_s5] sm:$0xff] }
 0x58d   :  { %v908_v37 = vpop.f32.mrf.mxu0 }
 0x58e   :  { %v909_v16 = vadd.f32 %v1927_v58, %v908_v37 }
 0x58f   :  { %v2194_v38 = vpop.f32.mrf.mxu0 }
 0x591   :  { %v1069_v40 = vpop.f32.mrf.mxu0 }
 0x592   :  { %v1070_v41 = vadd.f32 %v1934_v39, %v1069_v40  ;;  %v1250_v40 = vsel %vm1247_vm5, 1.0, %v2362_v7 }
 0x593   :  { %v2220_v42 = vpop.f32.mrf.mxu0 }
 0x594   :  { %v1083_v43 = vmin.f32 %v1070_v41, 10.0  ;;  %v1244_v42 = vadd.s32 16, %v1242_v27 }
 0x595   :  { %v1074_v44 = vpop.f32.mrf.mxu0 }
 0x596   :  { %v1086_v45 = vmul.f32 1.442695, %v1083_v43  ;;  %v1075_v46 = vadd.f32 %v1934_v39, %v1074_v44  ;;  %vm1249_vm9 = vcmp.eq.s32.totalorder %v1244_v42, %v1246_v28 }
 0x597   :  { %v2223_v47 = vpop.f32.mrf.mxu0 }
 0x598   :  { %2350 = vpow2.f32 %v1086_v45  ;;  %v1084_v48 = vmin.f32 %v1075_v46, 10.0  ;;  %v1136_v45 = vld [vmem:[%s2944_s11 + $0x10] sm:$0xff]  ;;  %v1236_v46 = vld [vmem:[%s2946_s5 + $0x8] sm:$0xff] }
 0x599   :  { %v1079_v49 = vpop.f32.mrf.mxu0 }
 0x59a   :  { %v1088_v50 = vmul.f32 1.442695, %v1084_v48  ;;  %v1080_v51 = vadd.f32 %v1934_v39, %v1079_v49  ;;  %v1227_v39 = vld [vmem:[%s2945_s10 + $0x8] sm:$0xff] }
 0x59b   :  { %v2226_v52 = vpop.f32.mrf.mxu0 }
 0x59c   :  { %2352 = vpow2.f32 %v1088_v50  ;;  %v1085_v53 = vmin.f32 %v1080_v51, 10.0  ;;  %v1228_v50 = vld [vmem:[%s2945_s10 + $0x10] sm:$0xff]  ;;  %v1251_v51 = vsel %vm1248_vm7, 1.0, %v2362_v7 }
 0x59e   :  { %v1090_v54 = vmul.f32 1.442695, %v1085_v53 }
 0x5a0   :  { %2354 = vpow2.f32 %v1090_v54 }
 0x5a5   :  { %v2351_v57 = vpop.eup %2350 }
 0x5a6   :  { %v1125_v60 = vmul.f32 %v2351_v57, %v1122_v56  ;;  %v1098_v21 = vmul.f32 %v2351_v57, %v1095_v15  ;;  %v1453_v15 = vld [vmem:[%s2947_s21 + $0x8] sm:$0xff] }
 0x5a8   :  { %v1128_v63 = vmul.f32 %v1125_v60, %v1104_v59  ;;  %v1116_v23 = vmul.f32 %v1104_v59, %v1098_v21  ;;  %v1252_v59 = vsel %vm1249_vm9, 1.0, %v2362_v7 }
 0x5a9   :  { %v2353_v0 = vpop.eup %2352 }
 0x5aa   :  { %v2745_v2 = vadd.f32 %v1128_v63, %v899_v62  ;;  %v1126_v3 = vmul.f32 %v2353_v0, %v1123_v61  ;;  %v1099_v13 = vmul.f32 %v2353_v0, %v1096_v6  ;;  %v1119_v25 = vadd.f32 %v1116_v23, %v899_v62 }
 0x5ac   :  { %v1129_v9 = vmul.f32 %v1126_v3, %v1109_v1  ;;  %v1117_v22 = vmul.f32 %v1109_v1, %v1099_v13 }
 0x5ad   :  { %v2355_v10 = vpop.eup %2354 }
 0x5ae   :  { %v1100_v11 = vmul.f32 %v2355_v10, %v1097_v4  ;;  %v1127_v12 = vmul.f32 %v2355_v10, %v1124_v5  ;;  %v2756_v14 = vadd.f32 %v1129_v9, %v904_v8  ;;  %v1120_v24 = vadd.f32 %v1117_v22, %v904_v8  ;;  %v1455_v10 = vld [vmem:[%s2947_s21 + $0x18] sm:$0xff] }
 0x5b0   :  { %v1118_v17 = vmul.f32 %v1114_v55, %v1100_v11  ;;  %v1130_v18 = vmul.f32 %v1127_v12, %v1114_v55  ;;  %v1237_v55 = vld [vmem:[%s2946_s5 + $0x10] sm:$0xff] }
 0x5b1   :  { %v1454_v11 = vld [vmem:[%s2947_s21 + $0x10] sm:$0xff] }
 0x5b2   :  { %v1121_v19 = vadd.f32 %v1118_v17, %v909_v16  ;;  %v2761_v20 = vadd.f32 %v1130_v18, %v909_v16  ;;  %v1452_v16 = vld [vmem:[%s2947_s21] sm:$0xff] }
 0x5b4   :  { %2228 = vmatpush3.xpose.msk.msra.mxu1 %vm453_vm3, %v1121_v19 }
 0x5b5   :  { %2229 = vmatprep.subr.mxu1 %v2362_v7 }
 0x5b8   :  { %2230 = vmatpush3.xpose.msk.msra.mxu1 %vm453_vm3, %v1120_v24 }
 0x5b9   :  { %2231 = vmatprep.subr.mxu1 %v2362_v7 }
 0x5bc   :  { %2232 = vmatpush3.xpose.msk.msra.mxu1 %vm453_vm3, %v1119_v25 }
 0x5bd   :  { %2257 = vmatprep.subr.mxu1 %v2362_v7 }
 0x5bf   :  { %2234 = vmatmul.mubr.msk.f32.vlgmr.msra.gmra.mxu1 %vm453_vm3, %v1119_v25 }
 0x5c0   :  { %2236 = vmatprep.mubr.msk.f32.mxu1 %vm2363_vm2, %v2362_v7 }
 0x5c3   :  { %2237 = vmatmul.mubr.msk.f32.gmra.mxu1 %vm453_vm3, %v1120_v24 }
 0x5c4   :  { %2239 = vmatprep.mubr.msk.f32.mxu1 %vm2363_vm2, %v2362_v7 }
 0x5c7   :  { %2240 = vmatmul.mubr.msk.f32.gmra.mxu1 %vm453_vm3, %v1121_v19 }
 0x5c8   :  { %2263 = vmatprep.mubr.msk.f32.mxu1 %vm2363_vm2, %v2362_v7 }
 0x67f   :  { %v1212_v30 = vpop.f32.mrf.mxu1 }
 0x680   :  { %v1213_v32 = vadd.f32 %v1212_v30, %v1134_v29  ;;  %v1647_v29 = vld [vmem:[%s2948_s23 + $0x18] sm:$0xff] }
 0x681   :  { %v2235_v34 = vpop.f32.mrf.mxu1 }
 0x682   :  { %vm1229_vm6 = vcmp.gt.f32.partialorder %v1213_v32, %v1226_v31 }
 0x683   :  { %v1232_v37 = vsel %vm1229_vm6, 1.0, %v2362_v7  ;;  %v1217_v38 = vpop.f32.mrf.mxu1 }
 0x684   :  { %v1218_v41 = vadd.f32 %v1217_v38, %v1135_v35  ;;  %v1238_v43 = vmul.f32 %v1235_v36, %v1232_v37  ;;  %v1646_v36 = vld [vmem:[%s2948_s23 + $0x10] sm:$0xff]  ;;  %v1645_v37 = vld [vmem:[%s2948_s23 + $0x8] sm:$0xff]  ;;  %v1644_v38 = vld [vmem:[%s2948_s23] sm:$0xff] }
 0x685   :  { %v2238_v44 = vpop.f32.mrf.mxu1 }
 0x686   :  { %vm1230_vm8 = vcmp.gt.f32.partialorder %v1218_v41, %v1227_v39  ;;  %v1253_v47 = vmax.f32 %v1238_v43, %v1250_v40  ;;  %v1953_v39 = vld [vmem:[%s2949_s22] ss:$0 sm:$0xff] }
 0x687   :  { %v1233_v48 = vsel %vm1230_vm8, 1.0, %v2362_v7  ;;  %v1222_v49 = vpop.f32.mrf.mxu1 }
 0x688   :  { %v1223_v52 = vadd.f32 %v1222_v49, %v1136_v45  ;;  %v1256_v53 = vsel %vm639_vm4, %v1253_v47, 0.0  ;;  %v1239_v54 = vmul.f32 %v1236_v46, %v1233_v48 }
 0x689   :  { %1257 = vadd.xlane.f32.xlu1 %v1256_v53  ;;  %v2241_v56 = vpop.f32.mrf.mxu1 }
 0x68a   :  { %vm1231_vm10 = vcmp.gt.f32.partialorder %v1223_v52, %v1228_v50  ;;  %v1254_v57 = vmax.f32 %v1239_v54, %v1251_v51 }
 0x68b   :  { %v1234_v58 = vsel %vm1231_vm10, 1.0, %v2362_v7 }
 0x68c   :  { %v1240_v60 = vmul.f32 %v1237_v55, %v1234_v58  ;;  %v1259_v61 = vsel %vm639_vm4, %v1254_v57, 0.0 }
 0x68d   :  { %1260 = vadd.xlane.f32.xlu0 %v1259_v61 }
 0x68e   :  { %v1255_v62 = vmax.f32 %v1240_v60, %v1252_v59 }
 0x690   :  { %2243 = vmatpush3.msra.mxu0 %v1255_v62  ;;  %v1262_v63 = vsel %vm639_vm4, %v1255_v62, 0.0  ;;  %v1960_v62 = vld [vmem:[%s2950_s24] ss:$0 sm:$0xff] }
 0x691   :  { %2244 = vmatprep.subr.mxu0 %v2362_v7  ;;  %1263 = vadd.xlane.f32.xlu0 %v1262_v63 }
 0x692   :  { %2245 = vmatpush3.msra.mxu0 %v1254_v57 }
 0x693   :  { %2246 = vmatprep.subr.mxu0 %v2362_v7 }
 0x694   :  { %2247 = vmatpush3.msra.mxu0 %v1253_v47 }
 0x695   :  { %2272 = vmatprep.subr.mxu0 %v2362_v7 }
 0x712   :  { %v1258_v0 = vpop.xlane.xlu1 %1257 }
 0x713   :  { %v1265_v1 = vmax.f32 %v1258_v0, 1e-12 }
 0x715   :  { %2356 = vrsqrt.f32 %v1265_v1 }
 0x716   :  { %v1261_v3 = vpop.xlane.xlu0 %1260 }
 0x717   :  { %v1266_v4 = vmax.f32 %v1261_v3, 1e-12 }
 0x719   :  { %2358 = vrsqrt.f32 %v1266_v4 }
 0x71a   :  { %v1264_v5 = vpop.xlane.xlu0 %1263 }
 0x71b   :  { %v1267_v6 = vmax.f32 %v1264_v5, 1e-12  ;;  %v1824_v5 = vld [vmem:[%s2951_s6] sm:$0xff] }
 0x71d   :  { %2360 = vrsqrt.f32 %v1267_v6 }
 0x722   :  { %v2357_v8 = vpop.eup %2356 }
 0x723   :  { %v1271_v9 = vmul.f32 %v2357_v8, %v1250_v40 }
 0x725   :  { %2249 = vmatmul.mubr.msk.f32.vlgmr.msra.gmra.mxu0 %vm639_vm4, %v1271_v9 }
 0x726   :  { %v2359_v12 = vpop.eup %2358  ;;  %2251 = vmatprep.mubr.msk.f32.mxu0 %vm2363_vm2, %v2362_v7  ;;  %2273 = vmatpush3.msra.mxu0 %v1455_v10 }
 0x727   :  { %v1272_v13 = vmul.f32 %v2359_v12, %v1251_v51  ;;  %2274 = vmatprep.subr.mxu0 %v2362_v7 }
 0x728   :  { %2275 = vmatpush3.msra.mxu0 %v1454_v11 }
 0x729   :  { %2252 = vmatmul.mubr.msk.f32.gmra.mxu0 %vm639_vm4, %v1272_v13  ;;  %2276 = vmatprep.subr.mxu0 %v2362_v7 }
 0x72a   :  { %v2361_v17 = vpop.eup %2360  ;;  %2254 = vmatprep.mubr.msk.f32.mxu0 %vm2363_vm2, %v2362_v7  ;;  %2277 = vmatpush3.msra.mxu0 %v1453_v15 }
 0x72b   :  { %v1273_v18 = vmul.f32 %v2361_v17, %v1252_v59  ;;  %2278 = vmatprep.subr.mxu0 %v2362_v7 }
 0x72c   :  { %2279 = vmatpush3.msra.mxu0 %v1452_v16 }
 0x72d   :  { %2255 = vmatmul.mubr.msk.f32.gmra.mxu0 %vm639_vm4, %v1273_v18  ;;  %2258 = vmatpush3.msra.mxu1 %v1273_v18 }
 0x72e   :  { %2259 = vmatprep.subr.mxu1 %v2362_v7  ;;  %2280 = vmatprep.mubr.msk.f32.mxu0 %vm2363_vm2, %v2362_v7 }
 0x72f   :  { %2260 = vmatpush3.msra.mxu1 %v1272_v13  ;;  %2304 = vmatprep.subr.mxu0 %v2362_v7 }
 0x730   :  { %2261 = vmatprep.subr.mxu1 %v2362_v7 }
 0x731   :  { %2262 = vmatpush3.msra.mxu1 %v1271_v9  ;;  %2281 = vmatmul.mubr.msk.f32.vlgmr.msra.gmra.mxu0 %vm453_vm3, %v2745_v2 }
 0x732   :  { %2283 = vmatprep.mubr.msk.f32.mxu0 %vm2363_vm2, %v2362_v7  ;;  %2289 = vmatprep.subr.mxu1 %v2362_v7 }
 0x733   :  { %2305 = vmatpush3.msra.mxu0 %v1647_v29 }
 0x734   :  { %2306 = vmatprep.subr.mxu0 %v2362_v7 }
 0x735   :  { %2284 = vmatmul.mubr.msk.f32.gmra.mxu0 %vm453_vm3, %v2756_v14 }
 0x736   :  { %2286 = vmatprep.mubr.msk.f32.mxu0 %vm2363_vm2, %v2362_v7  ;;  %2307 = vmatpush3.msra.mxu0 %v1646_v36 }
 0x737   :  { %2308 = vmatprep.subr.mxu0 %v2362_v7 }
 0x738   :  { %2309 = vmatpush3.msra.mxu0 %v1645_v37 }
 0x739   :  { %2287 = vmatmul.mubr.msk.f32.gmra.mxu0 %vm453_vm3, %v2761_v20  ;;  %2310 = vmatprep.subr.mxu0 %v2362_v7 }
 0x73a   :  { %2312 = vmatprep.mubr.msk.f32.mxu0 %vm2363_vm2, %v2362_v7  ;;  %2311 = vmatpush3.msra.mxu0 %v1644_v38 }
 0x73b   :  { %2336 = vmatprep.subr.mxu0 %v2362_v7 }
 0x7e5   :  { %v1349_v19 = vpop.f32.mrf.mxu0 }
 0x7e6   :  { %2264 = vmatmul.mubr.msk.f32.vlgmr.msra.gmra.mxu1 %vm639_vm4, %v1349_v19 }
 0x7e7   :  { %v2250_v2 = vpop.f32.mrf.mxu0  ;;  %2266 = vmatprep.mubr.msk.f32.mxu1 %vm2363_vm2, %v2362_v7 }
 0x7e9   :  { %v1354_v21 = vpop.f32.mrf.mxu0 }
 0x7ea   :  { %2267 = vmatmul.mubr.msk.f32.gmra.mxu1 %vm639_vm4, %v1354_v21 }
 0x7eb   :  { %v2253_v14 = vpop.f32.mrf.mxu0  ;;  %2269 = vmatprep.mubr.msk.f32.mxu1 %vm2363_vm2, %v2362_v7 }
 0x7ed   :  { %v1359_v22 = vpop.f32.mrf.mxu0 }
 0x7ee   :  { %2270 = vmatmul.mubr.msk.f32.gmra.mxu1 %vm639_vm4, %v1359_v22 }
 0x7ef   :  { %v2256_v20 = vpop.f32.mrf.mxu0  ;;  %2295 = vmatprep.mubr.msk.f32.mxu1 %vm2363_vm2, %v2362_v7 }
 0x7f1   :  { %v1531_v23 = vpop.f32.mrf.mxu0 }
 0x7f3   :  { %v2282_v24 = vpop.f32.mrf.mxu0 }
 0x7f5   :  { %v1536_v25 = vpop.f32.mrf.mxu0 }
 0x7f7   :  { %v2285_v26 = vpop.f32.mrf.mxu0 }
 0x7f9   :  { %v1541_v27 = vpop.f32.mrf.mxu0 }
 0x7fa   :  { %2290 = vmatpush3.msra.mxu1 %v1541_v27 }
 0x7fb   :  { %v2288_v28 = vpop.f32.mrf.mxu0  ;;  %2291 = vmatprep.subr.mxu1 %v2362_v7 }
 0x7fc   :  { %2292 = vmatpush3.msra.mxu1 %v1536_v25 }
 0x7fd   :  { %2293 = vmatprep.subr.mxu1 %v2362_v7 }
 0x7fe   :  { %2294 = vmatpush3.msra.mxu1 %v1531_v23 }
 0x7ff   :  { %2321 = vmatprep.subr.mxu1 %v2362_v7 }
 0x8a6   :  { %v1438_v30 = vpop.f32.mrf.mxu1 }
 0x8a7   :  { %2296 = vmatmul.mubr.msk.f32.vlgmr.msra.gmra.mxu1 %vm639_vm4, %v1438_v30 }
 0x8a8   :  { %v2265_v31 = vpop.f32.mrf.mxu1  ;;  %2298 = vmatprep.mubr.msk.f32.mxu1 %vm2363_vm2, %v2362_v7 }
 0x8aa   :  { %v1443_v32 = vpop.f32.mrf.mxu1 }
 0x8ab   :  { %2299 = vmatmul.mubr.msk.f32.gmra.mxu1 %vm639_vm4, %v1443_v32 }
 0x8ac   :  { %v2268_v33 = vpop.f32.mrf.mxu1  ;;  %2301 = vmatprep.mubr.msk.f32.mxu1 %vm2363_vm2, %v2362_v7 }
 0x8ae   :  { %v1448_v34 = vpop.f32.mrf.mxu1 }
 0x8af   :  { %2302 = vmatmul.mubr.msk.f32.gmra.mxu1 %vm639_vm4, %v1448_v34 }
 0x8b0   :  { %v2271_v35 = vpop.f32.mrf.mxu1  ;;  %2327 = vmatprep.mubr.msk.f32.mxu1 %vm2363_vm2, %v2362_v7 }
 0x967   :  { %v1627_v40 = vpop.f32.mrf.mxu1 }
 0x968   :  { %v1628_v41 = vadd.f32 %v1953_v39, %v1627_v40 }
 0x969   :  { %v2297_v42 = vpop.f32.mrf.mxu1 }
 0x96a   :  { %v1641_v43 = vmax.f32 %v1628_v41, 0.0 }
 0x96b   :  { %v1632_v44 = vpop.f32.mrf.mxu1 }
 0x96c   :  { %v1633_v45 = vadd.f32 %v1953_v39, %v1632_v44  ;;  %2313 = vmatmul.mubr.msk.f32.vlgmr.msra.gmra.mxu0 %vm453_vm3, %v1641_v43 }
 0x96d   :  { %v2300_v46 = vpop.f32.mrf.mxu1  ;;  %2315 = vmatprep.mubr.msk.f32.mxu0 %vm2363_vm2, %v2362_v7 }
 0x96e   :  { %v1642_v47 = vmax.f32 %v1633_v45, 0.0 }
 0x96f   :  { %v1637_v48 = vpop.f32.mrf.mxu1 }
 0x970   :  { %v1638_v49 = vadd.f32 %v1953_v39, %v1637_v48  ;;  %2316 = vmatmul.mubr.msk.f32.gmra.mxu0 %vm453_vm3, %v1642_v47 }
 0x971   :  { %v2303_v50 = vpop.f32.mrf.mxu1  ;;  %2318 = vmatprep.mubr.msk.f32.mxu0 %vm2363_vm2, %v2362_v7 }
 0x972   :  { %v1643_v51 = vmax.f32 %v1638_v49, 0.0 }
 0x974   :  { %2319 = vmatmul.mubr.msk.f32.gmra.mxu0 %vm453_vm3, %v1643_v51 }
 0x975   :  { %2342 = vmatprep.mubr.msk.f32.mxu0 %vm2363_vm2, %v2362_v7 }
 0xa2c   :  { %v1723_v52 = vpop.f32.mrf.mxu0 }
 0xa2e   :  { %v2314_v53 = vpop.f32.mrf.mxu0 }
 0xa30   :  { %v1728_v54 = vpop.f32.mrf.mxu0 }
 0xa32   :  { %v2317_v55 = vpop.f32.mrf.mxu0 }
 0xa34   :  { %v1733_v56 = vpop.f32.mrf.mxu0 }
 0xa35   :  { %2322 = vmatpush3.msra.mxu1 %v1733_v56 }
 0xa36   :  { %v2320_v57 = vpop.f32.mrf.mxu0  ;;  %2323 = vmatprep.subr.mxu1 %v2362_v7 }
 0xa37   :  { %2324 = vmatpush3.msra.mxu1 %v1728_v54 }
 0xa38   :  { %2325 = vmatprep.subr.mxu1 %v2362_v7 }
 0xa39   :  { %2326 = vmatpush3.msra.mxu1 %v1723_v52 }
 0xa3a   :  { %2328 = vmatmul.mubr.msk.f32.vlgmr.msra.gmra.mxu1 %vm639_vm4, %v1438_v30 }
 0xa3b   :  { %2330 = vmatprep.mubr.msk.f32.mxu1 %vm2363_vm2, %v2362_v7 }
 0xa3e   :  { %2331 = vmatmul.mubr.msk.f32.gmra.mxu1 %vm639_vm4, %v1443_v32 }
 0xa3f   :  { %2333 = vmatprep.mubr.msk.f32.mxu1 %vm2363_vm2, %v2362_v7 }
 0xa42   :  { %2334 = vmatmul.mubr.msk.f32.gmra.mxu1 %vm639_vm4, %v1448_v34 }
 0xafa   :  { %v1810_v58 = vpop.f32.mrf.mxu1 }
 0xafb   :  { %v1811_v4 = vadd.f32 %v1960_v62, %v1810_v58 }
 0xafc   :  { %v2329_v59 = vpop.f32.mrf.mxu1 }
 0xafe   :  { %v1815_v60 = vpop.f32.mrf.mxu1 }
 0xaff   :  { %v1816_v3 = vadd.f32 %v1960_v62, %v1815_v60 }
 0xb00   :  { %v2332_v61 = vpop.f32.mrf.mxu1 }
 0xb02   :  { %v1820_v63 = vpop.f32.mrf.mxu1 }
 0xb03   :  { %v1821_v0 = vadd.f32 %v1960_v62, %v1820_v63 }
 0xb04   :  { %v2335_v1 = vpop.f32.mrf.mxu1 }
 0xb05   :  { %2337 = vmatpush3.msra.mxu0 %v1821_v0 }
 0xb06   :  { %2338 = vmatprep.subr.mxu0 %v2362_v7 }
 0xb07   :  { %2339 = vmatpush3.msra.mxu0 %v1816_v3 }
 0xb08   :  { %2340 = vmatprep.subr.mxu0 %v2362_v7 }
 0xb09   :  { %2341 = vmatpush3.msra.mxu0 %v1811_v4 }
 0xb0a   :  { %2343 = vmatmul.mubr.msk.f32.vlgmr.msra.gmra.mxu0 %vm639_vm4, %v1824_v5 }
 0xbca   :  { %v1894_v6 = vpop.f32.mrf.mxu0 }
 0xbcb   :  { %1898 = vst [vmem:[%s2952_s25] sm:$0xff] %v1894_v6 }
 0xbcc   :  { %v2344_v8 = vpop.f32.mrf.mxu0 }

</bundles_post_ra>
